<compile_context>
chip_gen: v7x
topology: tpu7x:2x2x1
jax: 0.10.0
libtpu: 0.0.40
codegen_flags: <defaults>
</compile_context>

<pallas_src>
import jax
import jax.numpy as jnp
from jax.experimental import pallas as pl
from jax.experimental.pallas import tpu as pltpu

_LANES = 128


def _round_up(a: int, b: int) -> int:
    return ((a + b - 1) // b) * b


def _perceptron_kernel(x_ref, w_ref, b_ref, o_ref):
    # x_ref: (TILE_R, 256) f32 VMEM  -- 128 interleaved (x0, x1) pairs per slab row.
    # w_ref: (256, 128)    f32 VMEM  -- constant selection-weight matrix (resident).
    # b_ref: (1,)          f32 SMEM  -- bias scalar.
    # o_ref: (TILE_R, 128) f32 VMEM  -- flat order == natural batch order.
    #
    # Note: Mosaic does not apply XLA's "default precision" bf16 demotion policy to
    # f32 matmuls; if stricter control is ever needed, pass precision=HIGHEST.
    z = jnp.dot(x_ref[...], w_ref[...], preferred_element_type=jnp.float32)
    z = z + b_ref[0]
    # sigmoid(z) = 0.5 * (tanh(z / 2) + 1): one EUP push, no divide.
    o_ref[...] = 0.5 * jnp.tanh(0.5 * z) + 0.5


def perceptron_forward(x, weight, bias, *, tile_rows=4096):
    """x: (N, 2), weight: (1, 2), bias: (1,)  ->  (N, 1) f32  sigmoid(x @ W.T + b)."""
    n = x.shape[0]
    x32 = x.astype(jnp.float32)

    # --- tiling: batch rows grouped 128-per-lane-row; TILE_R slab rows per grid step.
    m = pl.cdiv(n, _LANES)                                     # number of 128-wide row groups
    tile_rows = min(tile_rows, _round_up(pl.cdiv(m, 8), 8))    # keep >= ~8 grid blocks (v7x 2 TCs)
    tile_rows = max(8, _round_up(tile_rows, 8))                # sublane dim multiple of 8
    grid_m = pl.cdiv(m, tile_rows)
    m_pad = grid_m * tile_rows
    n_pad = m_pad * _LANES

    # --- interleaved slab view (m_pad, 256): zero-copy reshape when no padding is needed.
    if n_pad == n:
        x_flat = x32.reshape(-1)
    else:
        x_flat = jnp.zeros((2 * n_pad,), jnp.float32).at[: 2 * n].set(x32.reshape(-1))
    x_slab = x_flat.reshape(m_pad, 2 * _LANES)

    # --- constant de-interleave/weight matrix: W_big[2j + c, j] = weight[0, c].
    w = weight.astype(jnp.float32).reshape(2)
    w_big = jnp.kron(jnp.eye(_LANES, dtype=jnp.float32), w.reshape(2, 1))   # (256, 128)
    b_flat = bias.astype(jnp.float32).reshape(1)

    out = pl.pallas_call(
        _perceptron_kernel,
        out_shape=jax.ShapeDtypeStruct((m_pad, _LANES), jnp.float32),
        grid_spec=pltpu.PrefetchScalarGridSpec(
            num_scalar_prefetch=0,
            grid=(grid_m,),
            in_specs=[
                pl.BlockSpec((tile_rows, 2 * _LANES), lambda i: (i, 0)),  # x slab (streamed)
                pl.BlockSpec((2 * _LANES, _LANES), lambda i: (0, 0)),     # W_big (resident)
                pl.BlockSpec(memory_space=pltpu.MemorySpace.SMEM),        # bias scalar
            ],
            out_specs=pl.BlockSpec((tile_rows, _LANES), lambda i: (i, 0)),
        ),
        compiler_params=pltpu.CompilerParams(
            dimension_semantics=("parallel",),   # independent batch tiles -> megacore sharding
        ),
    )(x_slab, w_big, b_flat)

    # Flat order of `out` is the natural batch order -> free reshape + tail slice.
    return out.reshape(n_pad, 1)[:n]


if __name__ == "__main__":
    key = jax.random.PRNGKey(0)
    kx, kw, kb = jax.random.split(key, 3)

    batch, in_features, out_features = 8, 2, 1

    # nn.Linear-style init: U(-1/sqrt(fan_in), +1/sqrt(fan_in)).
    bound = 1.0 / jnp.sqrt(in_features)
    weight = jax.random.uniform(kw, (out_features, in_features), jnp.float32, -bound, bound)
    bias = jax.random.uniform(kb, (out_features,), jnp.float32, -bound, bound)
    x = jax.random.normal(kx, (batch, in_features), jnp.float32)

    # Snap test data to bf16-representable values so the MXU product path is bit-exact
    # regardless of how many matmul passes the compiler chooses; the check below then
    # isolates layout / W_big construction / bias / sigmoid correctness.
    snap = lambda a: a.astype(jnp.bfloat16).astype(jnp.float32)
    x, weight, bias = snap(x), snap(weight), snap(bias)

    y = jax.jit(perceptron_forward)(x, weight, bias)
    jax.block_until_ready(y)

    # Exact Linear(2, 1) + sigmoid reference, computed elementwise (no matmul).
    z_ref = x[:, 0:1] * weight[0, 0] + x[:, 1:2] * weight[0, 1] + bias
    y_ref = jax.nn.sigmoid(z_ref)

    assert y.shape == (batch, out_features)
    assert jnp.allclose(y, y_ref, atol=1e-5, rtol=1e-5)

    print("KERNEL_OK")
</pallas_src>

<mosaic_0001>
module attributes {stable_mosaic.version = 11 : i64} {
  func.func @_perceptron_kernel(%arg0: i32, %arg1: memref<8x256xf32, #tpu.memory_space<vmem>>, %arg2: memref<256x128xf32, #tpu.memory_space<vmem>>, %arg3: memref<1xf32, #tpu.memory_space<smem>>, %arg4: memref<8x128xf32, #tpu.memory_space<vmem>>) attributes {dimension_semantics = [#tpu.dimension_semantics<parallel>], iteration_bounds = array<i64: 1>, scalar_prefetch = 0 : i64, scratch_operands = 0 : i64, tpu.core_type = #tpu.core_type<tc>, window_params = [{transform_indices = @transform_0, window_bounds = array<i64: 8, 256>}, {pipeline_mode = #tpu.pipeline_mode<synchronous>, transform_indices = @transform_1, window_bounds = array<i64: 256, 128>}, {transform_indices = @transform_2, window_bounds = array<i64: 1>}, {transform_indices = @transform_3, window_bounds = array<i64: 8, 128>}]} {
    %c0 = arith.constant 0 : index
    %c0_0 = arith.constant 0 : index
    %0 = vector.load %arg1[%c0, %c0_0] : memref<8x256xf32, #tpu.memory_space<vmem>>, vector<8x256xf32>
    %c0_1 = arith.constant 0 : index
    %c0_2 = arith.constant 0 : index
    %1 = vector.load %arg2[%c0_1, %c0_2] : memref<256x128xf32, #tpu.memory_space<vmem>>, vector<256x128xf32>
    %cst = arith.constant dense<0.000000e+00> : vector<8x128xf32>
    %2 = tpu.matmul %0, %1, %cst {dimension_numbers = #tpu.dot_dimension_numbers<[1], [0], [0], [1], [0, 0, 1, 1], [], []>} : vector<8x256xf32>, vector<256x128xf32>, vector<8x128xf32> -> vector<8x128xf32>
    %c0_3 = arith.constant 0 : index
    %3 = memref.load %arg3[%c0_3] : memref<1xf32, #tpu.memory_space<smem>>
    %4 = vector.broadcast %3 : f32 to vector<8x128xf32>
    %5 = arith.addf %2, %4 : vector<8x128xf32>
    %cst_4 = arith.constant 5.000000e-01 : f32
    %6 = vector.broadcast %cst_4 : f32 to vector<8x128xf32>
    %7 = arith.mulf %6, %5 : vector<8x128xf32>
    %8 = math.tanh %7 : vector<8x128xf32>
    %cst_5 = arith.constant 5.000000e-01 : f32
    %9 = vector.broadcast %cst_5 : f32 to vector<8x128xf32>
    %10 = arith.mulf %9, %8 : vector<8x128xf32>
    %cst_6 = arith.constant 5.000000e-01 : f32
    %11 = vector.broadcast %cst_6 : f32 to vector<8x128xf32>
    %12 = arith.addf %10, %11 : vector<8x128xf32>
    %c0_7 = arith.constant 0 : index
    %c0_8 = arith.constant 0 : index
    %13 = vector.load %arg4[%c0_7, %c0_8] : memref<8x128xf32, #tpu.memory_space<vmem>>, vector<8x128xf32>
    tpu.vector_store %arg4[%c0_7, %c0_8], %12 {strides = array<i32>} : memref<8x128xf32, #tpu.memory_space<vmem>>, vector<8x128xf32>,
    return
  }
  func.func @transform_0(%arg0: i32) -> (i32, i32) {
    %c0_i32 = arith.constant 0 : i32
    %c0_i32_0 = arith.constant 0 : i32
    return %arg0, %c0_i32 : i32, i32
  }
  func.func @transform_1(%arg0: i32) -> (i32, i32) {
    %c0_i32 = arith.constant 0 : i32
    %c0_i32_0 = arith.constant 0 : i32
    %c0_i32_1 = arith.constant 0 : i32
    return %c0_i32, %c0_i32_0 : i32, i32
  }
  func.func @transform_2(%arg0: i32) -> i32 {
    %c0_i32 = arith.constant 0 : i32
    %c0_i32_0 = arith.constant 0 : i32
    return %c0_i32 : i32
  }
  func.func @transform_3(%arg0: i32) -> (i32, i32) {
    %c0_i32 = arith.constant 0 : i32
    %c0_i32_0 = arith.constant 0 : i32
    return %arg0, %c0_i32 : i32, i32
  }
}

</mosaic_0001>

<bundles_post_ra>
// kernel: perceptron_forward.1
= control target key start
LH: loop header
LB: loop body
LE: loop exit
PB: predicated region body
PF: predicated region fallthrough
CT: control target
= control target key end

     0   :  { %s327_s1 = inlined_call_operand.vmem [shape: f32[256,128], index: 1, kind: input, shape index: {}]   ;;  %s328_s0 = inlined_call_operand.vmem [shape: f32[8,256], index: 0, kind: input, shape index: {}]   ;;  %s329_s2 = inlined_call_operand.<no memory space> [shape: f32[1], index: 2, kind: input, shape index: {}]   ;;  %s330_s3 = inlined_call_operand.vmem [shape: f32[8,128], index: 3, kind: output, shape index: {}]  }
   0x1   :  { %v33_v0 = vld [vmem:[%s327_s1 + $0x80] sm:$0xff]  ;;  %v34_v1 = vld [vmem:[%s327_s1 + $0x88] sm:$0xff]  ;;  %v35_v5 = vld [vmem:[%s327_s1 + $0x90] sm:$0xff]  ;;  %v50_v51 = vstv %s329_s2 }
   0x2   :  { %v17_v2 = vld [vmem:[%s327_s1] sm:$0xff]  ;;  %v165_v3 = vpack.c.bf16 %v34_v1, %v33_v0  ;;  %v18_v4 = vld [vmem:[%s327_s1 + $0x8] sm:$0xff]  ;;  %v36_v6 = vld [vmem:[%s327_s1 + $0x98] sm:$0xff] }
   0x3   :  { %v167_v7 = vpack.c.bf16 %v18_v4, %v17_v2  ;;  %v169_v8 = vpack.c.bf16 %v36_v6, %v35_v5  ;;  %v19_v9 = vld [vmem:[%s327_s1 + $0x10] sm:$0xff]  ;;  %v20_v10 = vld [vmem:[%s327_s1 + $0x18] sm:$0xff]  ;;  %v37_v11 = vld [vmem:[%s327_s1 + $0xa0] sm:$0xff] }
   0x4   :  { %166 = vmatprep.subr.bf16.mxu0 %v165_v3  ;;  %v38_v12 = vld [vmem:[%s327_s1 + $0xa8] sm:$0xff]  ;;  %v171_v13 = vpack.c.bf16 %v20_v10, %v19_v9  ;;  %v21_v15 = vld [vmem:[%s327_s1 + $0x20] sm:$0xff]  ;;  %v39_v17 = vld [vmem:[%s327_s1 + $0xb0] sm:$0xff] }
   0x5   :  { %168 = vmatpush3.bf16.msra.mxu0 %v167_v7  ;;  %v173_v14 = vpack.c.bf16 %v38_v12, %v37_v11  ;;  %v22_v16 = vld [vmem:[%s327_s1 + $0x28] sm:$0xff]  ;;  %v40_v18 = vld [vmem:[%s327_s1 + $0xb8] sm:$0xff]  ;;  %v23_v21 = vld [vmem:[%s327_s1 + $0x30] sm:$0xff] }
   0x6   :  { %170 = vmatprep.subr.bf16.mxu0 %v169_v8  ;;  %v175_v19 = vpack.c.bf16 %v22_v16, %v21_v15  ;;  %v177_v20 = vpack.c.bf16 %v40_v18, %v39_v17  ;;  %v24_v22 = vld [vmem:[%s327_s1 + $0x38] sm:$0xff]  ;;  %v41_v23 = vld [vmem:[%s327_s1 + $0xc0] sm:$0xff]  ;;  %v42_v24 = vld [vmem:[%s327_s1 + $0xc8] sm:$0xff] }
   0x7   :  { %v16_v25 = vld [vmem:[%s328_s0 + $0x8] sm:$0xff]  ;;  %v179_v26 = vpack.c.bf16 %v24_v22, %v23_v21  ;;  %v181_v27 = vpack.c.bf16 %v42_v24, %v41_v23  ;;  %v25_v28 = vld [vmem:[%s327_s1 + $0x40] sm:$0xff]  ;;  %v43_v30 = vld [vmem:[%s327_s1 + $0xd0] sm:$0xff] }
   0x8   :  { %115 = vmatprep.mubr.f32.mxu0 %v16_v25  ;;  %v26_v29 = vld [vmem:[%s327_s1 + $0x48] sm:$0xff]  ;;  %v44_v31 = vld [vmem:[%s327_s1 + $0xd8] sm:$0xff]  ;;  %v27_v34 = vld [vmem:[%s327_s1 + $0x50] sm:$0xff] }
   0x9   :  { %172 = vmatpush3.bf16.msra.mxu0 %v171_v13  ;;  %v183_v32 = vpack.c.bf16 %v26_v29, %v25_v28  ;;  %v185_v33 = vpack.c.bf16 %v44_v31, %v43_v30  ;;  %v28_v35 = vld [vmem:[%s327_s1 + $0x58] sm:$0xff]  ;;  %v45_v36 = vld [vmem:[%s327_s1 + $0xe0] sm:$0xff]  ;;  %v46_v37 = vld [vmem:[%s327_s1 + $0xe8] sm:$0xff] }
   0xa   :  { %174 = vmatprep.subr.bf16.mxu0 %v173_v14  ;;  %v187_v38 = vpack.c.bf16 %v28_v35, %v27_v34  ;;  %v189_v39 = vpack.c.bf16 %v46_v37, %v45_v36  ;;  %v29_v40 = vld [vmem:[%s327_s1 + $0x60] sm:$0xff]  ;;  %v30_v41 = vld [vmem:[%s327_s1 + $0x68] sm:$0xff]  ;;  %v47_v42 = vld [vmem:[%s327_s1 + $0xf0] sm:$0xff] }
   0xb   :  { %v48_v43 = vld [vmem:[%s327_s1 + $0xf8] sm:$0xff]  ;;  %v191_v44 = vpack.c.bf16 %v30_v41, %v29_v40  ;;  %v31_v46 = vld [vmem:[%s327_s1 + $0x70] sm:$0xff]  ;;  %v15_v49 = vld [vmem:[%s328_s0] sm:$0xff] }
   0xc   :  { %v193_v45 = vpack.c.bf16 %v48_v43, %v47_v42  ;;  %v32_v47 = vld [vmem:[%s327_s1 + $0x78] sm:$0xff] }
   0xd   :  { %176 = vmatpush3.bf16.msra.mxu0 %v175_v19  ;;  %v195_v48 = vpack.c.bf16 %v32_v47, %v31_v46 }
   0xe   :  { %178 = vmatprep.subr.bf16.mxu0 %v177_v20 }
  0x11   :  { %180 = vmatpush3.bf16.msra.mxu0 %v179_v26 }
  0x12   :  { %182 = vmatprep.subr.bf16.mxu0 %v181_v27 }
  0x15   :  { %184 = vmatpush3.bf16.msra.mxu0 %v183_v32 }
  0x16   :  { %186 = vmatprep.subr.bf16.mxu0 %v185_v33 }
  0x19   :  { %188 = vmatpush3.bf16.msra.mxu0 %v187_v38 }
  0x1a   :  { %190 = vmatprep.subr.bf16.mxu0 %v189_v39 }
  0x1d   :  { %192 = vmatpush3.bf16.msra.mxu0 %v191_v44 }
  0x1e   :  { %194 = vmatprep.subr.bf16.mxu0 %v193_v45 }
  0x21   :  { %196 = vmatpush3.bf16.msra.mxu0 %v195_v48 }
  0x24   :  { %116 = vmatmul.mubr.f32.vlgmr.msra.gmra.mrb[0].mxu0 %v15_v49 }
  0xf7   :  { %v162_v50 = vpop.f32.mrb[0].mxu0 }
  0xf8   :  { %v163_v52 = vpop.f32.mrb[1].mxu0 }
  0xf9   :  { %v164_v53 = vadd.f32 %v163_v52, %v162_v50 }
  0xfb   :  { %v118_v54 = vadd.f32 %v164_v53, %v50_v51 }
  0xfd   :  { %v121_v55 = vmul.f32 0.5, %v118_v54 }
  0xff   :  { %197 = vtanh.f32 %v121_v55 }
 0x109   :  { %v198_v56 = vpop.eup %197 }
 0x10a   :  { %v123_v57 = vmul.f32 0.5, %v198_v56 }
 0x10c   :  { %v124_v58 = vadd.f32 0.5, %v123_v57 }
 0x10e   :  { %125 = vst [vmem:[%s330_s3] sm:$0xff] %v124_v58 }

</bundles_post_ra>
